<compile_context>
chip_gen: v6e
topology: v6e:2x2x1
jax: 0.10.0
libtpu: 0.0.40
codegen_flags: <defaults>
</compile_context>

<pallas_src>
import functools

import jax
import jax.numpy as jnp
from jax.experimental import pallas as pl
from jax.experimental.pallas import tpu as pltpu


def _soft_ce_kernel(x_ref, t_ref, out_ref, *, n_rows):
    """One (tile_n, C) tile -> one partial loss sum, replicated into (8, 128)."""
    tile_n = x_ref.shape[0]
    x = x_ref[...]
    t = t_ref[...]

    # sum_c(-t * (x - m - lse)) == (m + lse) * sum_c(t) - sum_c(t * x)
    # Row max is exact in the input dtype; only the (tile_n, 1) result is cast.
    m = jnp.max(x, axis=-1, keepdims=True).astype(jnp.float32)
    ex = jnp.exp(x.astype(jnp.float32) - m)
    lse = jnp.log(jnp.sum(ex, axis=-1, keepdims=True))
    t_sum = jnp.sum(t.astype(jnp.float32), axis=-1, keepdims=True)
    tx_sum = jnp.sum(t.astype(jnp.float32) * x.astype(jnp.float32),
                     axis=-1, keepdims=True)
    per_row = (m + lse) * t_sum - tx_sum                       # (tile_n, 1) f32

    # Mask tail rows of the (possibly partial) last block: OOB rows hold
    # unspecified data, so select (not multiply) them away.
    row = (jax.lax.broadcasted_iota(jnp.int32, (tile_n, 1), 0)
           + pl.program_id(0) * tile_n)
    per_row = jnp.where(row < n_rows, per_row, 0.0)

    block_sum = jnp.sum(per_row, axis=0, keepdims=True)        # (1, 1)
    out_ref[...] = jnp.broadcast_to(block_sum, out_ref.shape)  # one dense vreg


def _vmem_limit_bytes():
    """~75% of physical VMEM, capped at 100 MiB (v5e/v6e: 96 MiB, v7x: 48 MiB)."""
    try:
        cap = int(pltpu.get_tpu_info().vmem_capacity_bytes)
    except Exception:
        cap = 64 << 20          # conservative fallback: smallest (v7x) VMEM
    return int(min(cap * 3 // 4, 100 << 20))


def _choose_tile_n(n_rows, n_classes, itemsize, vmem_limit):
    """Row tile: big enough to amortize the ~0.35us per-step cost, small enough
    that 2 inputs x 2 pipeline buffers + f32 temporaries fit in VMEM."""
    # 2 inputs x 2 buffers in the input dtype + ~3 full-tile f32 temporaries.
    per_row_bytes = 4 * n_classes * itemsize + 12 * n_classes
    rows_vmem = max((vmem_limit - (1 << 20)) // max(per_row_bytes, 1), 16)
    # ~8 MiB of input bytes per grid step already hides per-step overhead.
    rows_target = max((8 << 20) // max(2 * n_classes * itemsize, 1), 16)
    tile = min(rows_vmem, rows_target, 16384)
    tile = max(16, (tile // 16) * 16)            # covers bf16 (16,128) packing
    if n_rows <= tile:
        if n_rows >= 2048:
            # Split so the grid has >=2 steps (megacore / v7x dual-TC sharding).
            half = ((n_rows + 1) // 2 + 15) // 16 * 16
            return int(min(half, tile))
        return int(n_rows)                       # single full block, no mask
    return int(tile)


def soft_target_cross_entropy(x, target, *, tile_n=None):
    """x, target: (..., C). Returns scalar float32 loss (mean over rows)."""
    assert x.shape == target.shape, "x and target must have the same shape"
    C = x.shape[-1]
    x2 = x.reshape(-1, C)
    t2 = target.reshape(-1, C)
    N = x2.shape[0]

    vmem_limit = _vmem_limit_bytes()
    if tile_n is None:
        tile_n = _choose_tile_n(N, C, jnp.dtype(x2.dtype).itemsize, vmem_limit)
    tile_n = int(min(tile_n, N))
    num_blocks = pl.cdiv(N, tile_n)

    in_bytes = (x2.size * jnp.dtype(x2.dtype).itemsize
                + t2.size * jnp.dtype(t2.dtype).itemsize)
    cost = pl.CostEstimate(
        flops=5 * N * C,
        transcendentals=N * C,
        bytes_accessed=in_bytes + num_blocks * 8 * 128 * 4,
    )

    partial_sums = pl.pallas_call(
        functools.partial(_soft_ce_kernel, n_rows=N),
        out_shape=jax.ShapeDtypeStruct((num_blocks * 8, 128), jnp.float32),
        grid_spec=pltpu.PrefetchScalarGridSpec(
            num_scalar_prefetch=0,
            grid=(num_blocks,),
            in_specs=[
                pl.BlockSpec((tile_n, C), lambda i: (i, 0)),
                pl.BlockSpec((tile_n, C), lambda i: (i, 0)),
            ],
            out_specs=pl.BlockSpec((8, 128), lambda i: (i, 0)),
        ),
        compiler_params=pltpu.CompilerParams(
            dimension_semantics=("parallel",),   # blocks write disjoint outputs
            vmem_limit_bytes=vmem_limit,
        ),
        cost_estimate=cost,
    )(x2, t2)

    per_block = partial_sums.reshape(num_blocks, 8, 128)[:, 0, 0]  # (num_blocks,)
    return jnp.sum(per_block) / jnp.float32(N)


def _reference(x, target):
    logp = jax.nn.log_softmax(x.astype(jnp.float32), axis=-1)
    return jnp.mean(jnp.sum(-target.astype(jnp.float32) * logp, axis=-1))


if __name__ == "__main__":
    key = jax.random.PRNGKey(0)
    kx, kt, kx2, kt2, kx3, kt3 = jax.random.split(key, 6)

    # --- small f32 case: single full block ---
    N, C = 16, 128
    x = jax.random.normal(kx, (N, C), dtype=jnp.float32)
    target = jax.nn.softmax(jax.random.normal(kt, (N, C), dtype=jnp.float32),
                            axis=-1)
    loss = jax.block_until_ready(soft_target_cross_entropy(x, target))
    ref = _reference(x, target)
    assert jnp.allclose(loss, ref, rtol=1e-5, atol=1e-5), (loss, ref)

    # --- bf16 inputs, row count not a multiple of 8 (single full block) ---
    N2 = 10
    xb = jax.random.normal(kx2, (N2, C), dtype=jnp.float32).astype(jnp.bfloat16)
    tb = jax.nn.softmax(jax.random.normal(kt2, (N2, C), dtype=jnp.float32),
                        axis=-1).astype(jnp.bfloat16)
    loss_b = jax.block_until_ready(soft_target_cross_entropy(xb, tb))
    ref_b = _reference(xb, tb)
    assert jnp.allclose(loss_b, ref_b, rtol=1e-4, atol=1e-4), (loss_b, ref_b)

    # --- multi-block grid with a partial (in-kernel masked) last block ---
    N3 = 40
    x3 = jax.random.normal(kx3, (N3, C), dtype=jnp.float32)
    t3 = jax.nn.softmax(jax.random.normal(kt3, (N3, C), dtype=jnp.float32),
                        axis=-1)
    loss_m = jax.block_until_ready(soft_target_cross_entropy(x3, t3, tile_n=16))
    ref_m = _reference(x3, t3)
    assert jnp.allclose(loss_m, ref_m, rtol=1e-5, atol=1e-5), (loss_m, ref_m)

    print("KERNEL_OK")
</pallas_src>

<mosaic_0001>
module attributes {stable_mosaic.version = 11 : i64} {
  func.func @_soft_ce_kernel(%arg0: i32, %arg1: memref<16x128xf32, #tpu.memory_space<vmem>>, %arg2: memref<16x128xf32, #tpu.memory_space<vmem>>, %arg3: memref<8x128xf32, #tpu.memory_space<vmem>>) attributes {dimension_semantics = [#tpu.dimension_semantics<parallel>], iteration_bounds = array<i64: 1>, scalar_prefetch = 0 : i64, scratch_operands = 0 : i64, tpu.core_type = #tpu.core_type<tc>, window_params = [{transform_indices = @transform_0, window_bounds = array<i64: 16, 128>}, {transform_indices = @transform_1, window_bounds = array<i64: 16, 128>}, {transform_indices = @transform_2, window_bounds = array<i64: 8, 128>}]} {
    %c0 = arith.constant 0 : index
    %c0_0 = arith.constant 0 : index
    %0 = vector.load %arg1[%c0, %c0_0] : memref<16x128xf32, #tpu.memory_space<vmem>>, vector<16x128xf32>
    %c0_1 = arith.constant 0 : index
    %c0_2 = arith.constant 0 : index
    %1 = vector.load %arg2[%c0_1, %c0_2] : memref<16x128xf32, #tpu.memory_space<vmem>>, vector<16x128xf32>
    %cst = arith.constant dense<0xFF800000> : vector<16xf32>
    %2 = vector.multi_reduction <maximumf>, %0, %cst [1] : vector<16x128xf32> to vector<16xf32>
    %3 = vector.shape_cast %2 : vector<16xf32> to vector<16x1xf32>
    %4 = vector.broadcast %3 : vector<16x1xf32> to vector<16x128xf32>
    %5 = arith.subf %0, %4 : vector<16x128xf32>
    %6 = math.exp %5 : vector<16x128xf32>
    %cst_3 = arith.constant dense<0.000000e+00> : vector<16xf32>
    %7 = vector.multi_reduction <add>, %6, %cst_3 [1] : vector<16x128xf32> to vector<16xf32>
    %8 = vector.shape_cast %7 : vector<16xf32> to vector<16x1xf32>
    %9 = math.log %8 : vector<16x1xf32>
    %cst_4 = arith.constant dense<0.000000e+00> : vector<16xf32>
    %10 = vector.multi_reduction <add>, %1, %cst_4 [1] : vector<16x128xf32> to vector<16xf32>
    %11 = vector.shape_cast %10 : vector<16xf32> to vector<16x1xf32>
    %12 = arith.mulf %1, %0 : vector<16x128xf32>
    %cst_5 = arith.constant dense<0.000000e+00> : vector<16xf32>
    %13 = vector.multi_reduction <add>, %12, %cst_5 [1] : vector<16x128xf32> to vector<16xf32>
    %14 = vector.shape_cast %13 : vector<16xf32> to vector<16x1xf32>
    %15 = arith.addf %3, %9 : vector<16x1xf32>
    %16 = arith.mulf %15, %11 : vector<16x1xf32>
    %17 = arith.subf %16, %14 : vector<16x1xf32>
    %18 = tpu.iota {dimensions = array<i32: 0>} : vector<16x1xi32>
    %c16_i32 = arith.constant 16 : i32
    %19 = arith.muli %arg0, %c16_i32 : i32
    %20 = vector.broadcast %19 : i32 to vector<16x1xi32>
    %21 = arith.addi %18, %20 : vector<16x1xi32>
    %c16_i32_6 = arith.constant 16 : i32
    %22 = vector.broadcast %c16_i32_6 : i32 to vector<16x1xi32>
    %23 = arith.cmpi slt, %21, %22 : vector<16x1xi32>
    %cst_7 = arith.constant 0.000000e+00 : f32
    %24 = vector.broadcast %cst_7 : f32 to vector<16x1xf32>
    %25 = arith.select %23, %17, %24 : vector<16x1xi1>, vector<16x1xf32>
    %cst_8 = arith.constant dense<0.000000e+00> : vector<1xf32>
    %26 = vector.multi_reduction <add>, %25, %cst_8 [0] : vector<16x1xf32> to vector<1xf32>
    %27 = vector.shape_cast %26 : vector<1xf32> to vector<1x1xf32>
    %28 = vector.shape_cast %27 : vector<1x1xf32> to vector<1x1xf32>
    %29 = vector.broadcast %28 : vector<1x1xf32> to vector<8x128xf32>
    %c0_9 = arith.constant 0 : index
    %c0_10 = arith.constant 0 : index
    %30 = vector.load %arg3[%c0_9, %c0_10] : memref<8x128xf32, #tpu.memory_space<vmem>>, vector<8x128xf32>
    tpu.vector_store %arg3[%c0_9, %c0_10], %29 {strides = array<i32>} : memref<8x128xf32, #tpu.memory_space<vmem>>, vector<8x128xf32>,
    return
  }
  func.func @transform_0(%arg0: i32) -> (i32, i32) {
    %c0_i32 = arith.constant 0 : i32
    %c0_i32_0 = arith.constant 0 : i32
    return %arg0, %c0_i32 : i32, i32
  }
  func.func @transform_1(%arg0: i32) -> (i32, i32) {
    %c0_i32 = arith.constant 0 : i32
    %c0_i32_0 = arith.constant 0 : i32
    return %arg0, %c0_i32 : i32, i32
  }
  func.func @transform_2(%arg0: i32) -> (i32, i32) {
    %c0_i32 = arith.constant 0 : i32
    %c0_i32_0 = arith.constant 0 : i32
    return %arg0, %c0_i32 : i32, i32
  }
}

</mosaic_0001>

<bundles_post_ra>
// kernel: tpu_custom_call.1
= control target key start
LH: loop header
LB: loop body
LE: loop exit
PB: predicated region body
PF: predicated region fallthrough
CT: control target
= control target key end

     0   :  { %7 = vsyncpa [#allocation3], 0  ;;  %s221_s0 = inlined_call_operand.hbm [shape: f32[16,128], index: 0, kind: input, shape index: {}]   ;;  %s222_s1 = inlined_call_operand.hbm [shape: f32[16,128], index: 1, kind: input, shape index: {}]   ;;  %s223_s2 = inlined_call_operand.hbm [shape: f32[8,128], index: 2, kind: output, shape index: {}]  }
   0x1   :  { %8 = vsyncpa [#allocation6], 0 }
   0x2   :  { %9 = vsyncpa [#allocation4], 0  ;;  %s192_s9 = smov [#allocation2]  }
   0x3   :  { %s15_s10 = sshll.u32 %s192_s9, 4  ;;  %s16_s10 = int_to_ptr.vmem [resolvable:$true] %s15_s10 }
   0x4   :  { %s134_s11 = scalar_lea.vmem %s16_s10, 256  ;;  %p139_p1 = scmp.lt.s32.totalorder %s16_s10, %s16_s10 }
   0x5   :  { %p135_p0 = scmp.ne.s32.totalorder %s16_s10, %s134_s11  ;;  %p140_p2 = scmp.lt.s32.totalorder %s134_s11, %s134_s11 }
   0x7   :  { %p141_p3 = por %p140_p2, %p139_p1 }
   0x9   :  { %p142_p4 = pnand %p141_p3, %p135_p0 }
   0xb   :  { %145 = shalt.err (!%p142_p4)
}
   0xc   :  { %s193_s12 = smov 128   ;;  %s194_s13 = smov 8  }
   0xd   :  { %21 = dma.hbm_to_vmem [thread:$0]  %s221_s0, 256, %s16_s10, [#allocation3], %s193_s12, %s193_s12, %s194_s13  }
   0xe   :  { %s195_s16 = smov [#allocation5]  }
   0xf   :  { %s27_s17 = sshll.u32 %s195_s16, 4  ;;  %s28_s17 = int_to_ptr.vmem [resolvable:$true] %s27_s17 }
  0x10   :  { %s154_s18 = scalar_lea.vmem %s28_s17, 256  ;;  %p159_p6 = scmp.lt.s32.totalorder %s28_s17, %s28_s17 }
  0x11   :  { %p155_p5 = scmp.ne.s32.totalorder %s28_s17, %s154_s18  ;;  %p160_p7 = scmp.lt.s32.totalorder %s154_s18, %s154_s18 }
  0x13   :  { %p161_p8 = por %p160_p7, %p159_p6 }
  0x15   :  { %p162_p9 = pnand %p161_p8, %p155_p5 }
  0x17   :  { %165 = shalt.err (!%p162_p9)
}
  0x18   :  { %33 = dma.hbm_to_vmem [thread:$0]  %s222_s1, 256, %s28_s17, [#allocation6], %s193_s12, %s193_s12, %s194_s13  }
  0x19   :  { %186 = dma.done.wait [#allocation3], 256  }
  0x1a   :  { %187 = vsyncadd [#allocation3], 4294967040 }
  0x1b   :  { %188 = dma.done.wait [#allocation6], 256  }
  0x1c   :  { %189 = vsyncadd [#allocation6], 4294967040  ;;  %v40_v0 = vld [vmem:[#allocation2] sm:$0xff]  ;;  %v41_v1 = vld [vmem:[#allocation2 + $0x8] sm:$0xff]  ;;  %s196_s0 = smov [#allocation7]  }
  0x1d   :  { %44 = vmax.xlane.f32.xlu0 %v40_v0  ;;  %v42_v2 = vld [vmem:[#allocation5] sm:$0xff]  ;;  %v43_v12 = vld [vmem:[#allocation5 + $0x8] sm:$0xff]  ;;  %s103_s1 = sshll.u32 %s196_s0, 4  ;;  %s104_s1 = int_to_ptr.vmem [resolvable:$true] %s103_s1 }
  0x1e   :  { %v66_v3 = vmul.f32 %v42_v2, %v40_v0  ;;  %v67_v13 = vmul.f32 %v43_v12, %v41_v1  ;;  %s166_s21 = scalar_lea.vmem %s104_s1, 128  ;;  %p171_p11 = scmp.lt.s32.totalorder %s104_s1, %s104_s1 }
  0x1f   :  { %p167_p10 = scmp.ne.s32.totalorder %s104_s1, %s166_s21  ;;  %p172_p12 = scmp.lt.s32.totalorder %s166_s21, %s166_s21 }
  0x21   :  { %46 = vmax.xlane.f32.xlu0 %v41_v1  ;;  %p173_p13 = por %p172_p12, %p171_p11 }
  0x23   :  { %p174_p0 = pnand %p173_p13, %p167_p10 }
  0x25   :  { %62 = vadd.xlane.f32.xlu0 %v42_v2 }
  0x29   :  { %68 = vadd.xlane.f32.xlu0 %v66_v3 }
  0xa6   :  { %v45_v4 = vpop.xlane.xlu0 %44 }
  0xa7   :  { %v48_v5 = vsub.f32 %v40_v0, %v45_v4 }
  0xa9   :  { %v50_v6 = vmul.f32 1.442695, %v48_v5 }
  0xaa   :  { %v47_v7 = vpop.xlane.xlu0 %46 }
  0xab   :  { %118 = vpow2.f32 %v50_v6  ;;  %v49_v8 = vsub.f32 %v41_v1, %v47_v7 }
  0xad   :  { %v52_v9 = vmul.f32 1.442695, %v49_v8 }
  0xae   :  { %v63_v18 = vpop.xlane.xlu0 %62 }
  0xaf   :  { %120 = vpow2.f32 %v52_v9 }
  0xb2   :  { %v69_v25 = vpop.xlane.xlu0 %68 }
  0xb8   :  { %v119_v10 = vpop.eup %118 }
  0xb9   :  { %54 = vadd.xlane.f32.xlu1 %v119_v10 }
  0xbc   :  { %v121_v11 = vpop.eup %120 }
  0xbd   :  { %56 = vadd.xlane.f32.xlu1 %v121_v11 }
  0xc1   :  { %64 = vadd.xlane.f32.xlu1 %v43_v12 }
  0xc5   :  { %70 = vadd.xlane.f32.xlu1 %v67_v13 }
 0x142   :  { %v55_v14 = vpop.xlane.xlu1 %54 }
 0x143   :  { %122 = vlog2.f32 %v55_v14 }
 0x146   :  { %v57_v15 = vpop.xlane.xlu1 %56 }
 0x147   :  { %124 = vlog2.f32 %v57_v15 }
 0x14a   :  { %v65_v19 = vpop.xlane.xlu1 %64 }
 0x14e   :  { %v71_v26 = vpop.xlane.xlu1 %70 }
 0x150   :  { %v123_v16 = vpop.eup %122 }
 0x151   :  { %v59_v17 = vmul.f32 0.6931472, %v123_v16 }
 0x153   :  { %v72_v20 = vadd.f32 %v59_v17, %v45_v4 }
 0x154   :  { %v125_v21 = vpop.eup %124 }
 0x155   :  { %v61_v22 = vmul.f32 0.6931472, %v125_v21  ;;  %v74_v23 = vmul.f32 %v72_v20, %v63_v18 }
 0x157   :  { %v73_v24 = vadd.f32 %v61_v22, %v47_v7  ;;  %v76_v28 = vsub.f32 %v74_v23, %v69_v25 }
 0x159   :  { %v75_v27 = vmul.f32 %v73_v24, %v65_v19 }
 0x15b   :  { %v77_v29 = vsub.f32 %v75_v27, %v71_v26 }
 0x15d   :  { %v89_v30 = vadd.f32 %v77_v29, %v76_v28 }
 0x15f   :  { %v90_v31 = vrot.slane %v89_v30, 4 }
 0x161   :  { %v91_v32 = vadd.f32 %v90_v31, %v89_v30 }
 0x163   :  { %v92_v33 = vrot.slane %v91_v32, 2 }
 0x165   :  { %v93_v34 = vadd.f32 %v92_v33, %v91_v32 }
 0x167   :  { %v94_v35 = vrot.slane %v93_v34, 1 }
 0x169   :  { %v95_v36 = vadd.f32 %v94_v35, %v93_v34 }
 0x16b   :  { %96 = vst [vmem:[#allocation7] sm:$0xff] %v95_v36 }
 0x16c   :  { %177 = shalt.err (!%p174_p0)
}
 0x16d   :  { %106 = dma.vmem_to_hbm [thread:$0]  %s104_s1, 128, %s223_s2, [#allocation4]  }
 0x16e   :  { %190 = dma.done.wait [#allocation4], 128  }
 0x16f   :  { %191 = vsyncadd [#allocation4], 4294967168 }
 0x170   :  { %110 = vsyncpa [#allocation3], 1 }
 0x171   :  { %111 = vsyncpa [#allocation6], 1 }
 0x172   :  { %112 = vsyncpa [#allocation4], 1 }

</bundles_post_ra>
